<compile_context>
chip_gen: v5e
topology: v5e:2x2
jax: 0.10.0
libtpu: 0.0.40
codegen_flags: <defaults>
</compile_context>

<pallas_src>
import functools
import math

import jax
import jax.numpy as jnp
from jax import lax
from jax.experimental import pallas as pl
from jax.experimental.pallas import tpu as pltpu


# ----------------------------------------------------------------------------
# Pallas kernel
# ----------------------------------------------------------------------------
def _rotate_half(u):
    """rotate-half: [u1, u2] -> [-u2, u1] along the last (lane) axis.

    For wide head dims this is equivalently pltpu.roll(u, D//2, -1) with a
    sign flip folded into the sin table; slice+concat is used here because it
    lowers cleanly for arbitrary (small) head widths.
    """
    h = u.shape[-1] // 2
    return jnp.concatenate([-u[:, h:], u[:, :h]], axis=-1)


def retention_kernel(xq_ref, xkv_ref, wq_ref, wvk_ref,
                     cosq_ref, sinq_ref, cosk_ref, sink_ref,
                     o_ref, q_scr, acc_scr, *, log_gamma, v_dim_padded):
    tq = xq_ref.shape[0]
    tk = xkv_ref.shape[0]
    qi = pl.program_id(1)
    ki = pl.program_id(2)
    q_start = qi * tq
    kv_start = ki * tk
    cdt = q_scr.dtype                      # MXU compute dtype (bf16 or f32)

    @pl.when(ki == 0)
    def _init():
        acc_scr[...] = jnp.zeros_like(acc_scr)
        # Q projection + xpos (rotate-half form), once per (batch, q tile).
        q = jnp.dot(xq_ref[...], wq_ref[...], preferred_element_type=jnp.float32)
        q_x = q * cosq_ref[...] + _rotate_half(q) * sinq_ref[...]
        q_scr[...] = q_x.astype(cdt)

    # Causal block skipping: kv tiles strictly above the diagonal contribute 0.
    @pl.when(kv_start <= q_start + (tq - 1))
    def _compute():
        # Fused [V_padded | K] projection in one matmul.
        kv = jnp.dot(xkv_ref[...], wvk_ref[...], preferred_element_type=jnp.float32)
        v = kv[:, :v_dim_padded]
        k = kv[:, v_dim_padded:]
        k_x = k * cosk_ref[...] + _rotate_half(k) * sink_ref[...]

        # scores = Q K^T, contracting the last dims (no explicit transpose).
        s = lax.dot_general(
            q_scr[...], k_x.astype(cdt),
            dimension_numbers=(((1,), (1,)), ((), ())),
            preferred_element_type=jnp.float32)                   # (tq, tk)

        # Per-tile decay D[n, m] = gamma^(n-m) if n >= m else 0, built on the
        # fly (exponent masked *before* exp to avoid inf for n < m).
        dn = (q_start - kv_start) + (
            lax.broadcasted_iota(jnp.int32, (tq, tk), 0)
            - lax.broadcasted_iota(jnp.int32, (tq, tk), 1))
        causal = dn >= 0
        decay = jnp.where(
            causal,
            jnp.exp(jnp.where(causal, dn, 0).astype(jnp.float32) * log_gamma),
            0.0)
        s = s * decay

        acc_scr[...] += jnp.dot(s.astype(cdt), v.astype(cdt),
                                preferred_element_type=jnp.float32)

    @pl.when(ki == pl.num_programs(2) - 1)
    def _finalize():
        o_ref[...] = acc_scr[...].astype(o_ref.dtype)


# ----------------------------------------------------------------------------
# Parameter / table construction (plain JAX, position-only constants)
# ----------------------------------------------------------------------------
def make_params(key, hidden_size, head_size):
    kq, kk, kv = jax.random.split(key, 3)
    w_q = jax.random.normal(kq, (hidden_size, head_size), jnp.float32) / hidden_size
    w_k = jax.random.normal(kk, (hidden_size, head_size), jnp.float32) / hidden_size
    w_v = jax.random.normal(kv, (hidden_size, head_size), jnp.float32) / hidden_size
    return w_q, w_k, w_v


def _xpos_base(seq_len, head_size, scale_base=512.0):
    half = head_size // 2
    scale = (jnp.arange(0, head_size, 2, dtype=jnp.float32) + 0.4 * head_size) / (
        1.4 * head_size)                                             # (half,)
    pos = jnp.arange(seq_len, dtype=jnp.float32)
    scale_pos = scale[None, :] ** (pos[:, None] / scale_base)        # (S, half)
    inv_freq = 1.0 / (10000.0 ** (jnp.arange(half, dtype=jnp.float32) / half))
    sinusoid = pos[:, None] * inv_freq[None, :]                      # (S, half)
    return jnp.sin(sinusoid), jnp.cos(sinusoid), scale_pos


def xpos_tables_halfform(seq_len, head_size, scale_base=512.0):
    """cos/sin tables for the rotate-half layout (two stacked identical halves)."""
    sin, cos, sp = _xpos_base(seq_len, head_size, scale_base)
    dup = lambda m: jnp.concatenate([m, m], axis=1)
    return dup(cos * sp), dup(sin * sp), dup(cos / sp), dup(sin / sp)


def xpos_tables_interleaved(seq_len, head_size, scale_base=512.0):
    """cos/sin tables in the original duplicate-interleaved layout (reference)."""
    sin, cos, sp = _xpos_base(seq_len, head_size, scale_base)
    dup = lambda m: jnp.repeat(m, 2, axis=1)
    return dup(cos * sp), dup(sin * sp), dup(cos / sp), dup(sin / sp)


def decay_matrix(seq_len, gamma):
    n = jnp.arange(seq_len)[:, None]
    m = jnp.arange(seq_len)[None, :]
    mask = n >= m
    expo = jnp.where(mask, n - m, 0).astype(jnp.float32)   # mask exponent first
    return jnp.where(mask, gamma ** expo, 0.0)


# ----------------------------------------------------------------------------
# pallas_call wrapper
# ----------------------------------------------------------------------------
def simple_retention(x, w_q, w_k, w_v, gamma, *, block_q=256, block_k=256,
                     compute_dtype=jnp.bfloat16):
    B, S, H = x.shape
    Dh = w_q.shape[1]
    assert Dh % 2 == 0
    Dhp = ((Dh + 127) // 128) * 128         # lane-dense padded V / output width

    tq = min(block_q, S)
    tk = min(block_k, S)
    assert S % tq == 0 and S % tk == 0, "sequence length must divide the tile size"
    nq, nk = S // tq, S // tk

    # Rotate-half reparameterization: permute Q/K weight columns (evens first,
    # then odds) offline.  Q K^T is invariant to this shared column
    # permutation, so results match the interleaved PyTorch xpos exactly.
    perm = jnp.concatenate([jnp.arange(0, Dh, 2), jnp.arange(1, Dh, 2)])
    w_q_h = w_q[:, perm]
    w_k_h = w_k[:, perm]
    w_v_pad = jnp.pad(w_v, ((0, 0), (0, Dhp - Dh)))
    w_vk = jnp.concatenate([w_v_pad, w_k_h], axis=1)        # (H, Dhp + Dh)

    cos_q, sin_q, cos_k, sin_k = xpos_tables_halfform(S, Dh)   # f32 (S, Dh)

    # Narrow MXU inputs (bf16 by default); elementwise tables stay f32.
    x_c = x.astype(compute_dtype)
    w_q_c = w_q_h.astype(compute_dtype)
    w_vk_c = w_vk.astype(compute_dtype)

    kernel = functools.partial(
        retention_kernel,
        log_gamma=float(math.log(gamma)),
        v_dim_padded=Dhp)

    grid_spec = pltpu.PrefetchScalarGridSpec(
        num_scalar_prefetch=0,
        grid=(B, nq, nk),
        in_specs=[
            pl.BlockSpec((pl.Squeezed(), tq, H), lambda b, qi, ki: (b, qi, 0)),  # X (q rows)
            pl.BlockSpec((pl.Squeezed(), tk, H), lambda b, qi, ki: (b, ki, 0)),  # X (kv rows)
            pl.BlockSpec((H, Dh), lambda b, qi, ki: (0, 0)),                     # W_Q (perm)
            pl.BlockSpec((H, Dhp + Dh), lambda b, qi, ki: (0, 0)),               # [W_Vpad|W_K]
            pl.BlockSpec((tq, Dh), lambda b, qi, ki: (qi, 0)),                   # cos_q
            pl.BlockSpec((tq, Dh), lambda b, qi, ki: (qi, 0)),                   # sin_q
            pl.BlockSpec((tk, Dh), lambda b, qi, ki: (ki, 0)),                   # cos_k
            pl.BlockSpec((tk, Dh), lambda b, qi, ki: (ki, 0)),                   # sin_k
        ],
        out_specs=pl.BlockSpec((pl.Squeezed(), tq, Dhp), lambda b, qi, ki: (b, qi, 0)),
        scratch_shapes=[
            pltpu.VMEM((tq, Dh), compute_dtype),    # Q tile (xpos applied), cached over kv
            pltpu.VMEM((tq, Dhp), jnp.float32),     # f32 output accumulator
        ],
    )

    # Explicit VMEM budget: double-buffered blocks + scratch + slack, clamped
    # so it also fits v7x's 64 MiB physical VMEM.
    csz = jnp.dtype(compute_dtype).itemsize
    blk_bytes = ((tq * H + tk * H + H * Dh + H * (Dhp + Dh)) * csz
                 + (2 * tq + 2 * tk) * Dh * 4 + tq * Dhp * 4)
    scratch_bytes = tq * Dh * csz + tq * Dhp * 4
    vmem_limit = int(min(max(2 * blk_bytes + scratch_bytes + (4 << 20), 16 << 20),
                         64 << 20))

    out_padded = pl.pallas_call(
        kernel,
        out_shape=jax.ShapeDtypeStruct((B, S, Dhp), jnp.float32),
        grid_spec=grid_spec,
        compiler_params=pltpu.CompilerParams(
            dimension_semantics=("parallel", "parallel", "arbitrary"),
            vmem_limit_bytes=vmem_limit),
    )(x_c, x_c, w_q_c, w_vk_c, cos_q, sin_q, cos_k, sin_k)

    return out_padded[..., :Dh]


# ----------------------------------------------------------------------------
# Pure-JAX reference (mirrors the PyTorch forward exactly) for a sanity check.
# ----------------------------------------------------------------------------
def _rotate_every_two(x):
    x1, x2 = x[..., ::2], x[..., 1::2]
    return jnp.stack((-x2, x1), axis=-1).reshape(x.shape)


def simple_retention_ref(x, w_q, w_k, w_v, gamma):
    S = x.shape[1]
    Dh = w_q.shape[1]
    cos_q, sin_q, cos_k, sin_k = xpos_tables_interleaved(S, Dh)
    d_mat = decay_matrix(S, gamma)
    q = x @ w_q
    k = x @ w_k
    v = x @ w_v
    q = q * cos_q[None] + _rotate_every_two(q) * sin_q[None]
    k = k * cos_k[None] + _rotate_every_two(k) * sin_k[None]
    ret = jnp.einsum("bnd,bmd->bnm", q, k) * d_mat[None]
    return jnp.einsum("bnm,bmd->bnd", ret, v)


if __name__ == "__main__":
    # Small, module-consistent shapes: hidden=32, head_size=16, seq=8, batch=2.
    B, S, H, Dh = 2, 8, 32, 16
    gamma = 0.9

    key = jax.random.PRNGKey(0)
    kx, kp = jax.random.split(key)
    x = jax.random.normal(kx, (B, S, H), jnp.float32)
    w_q, w_k, w_v = make_params(kp, H, Dh)

    ref = simple_retention_ref(x, w_q, w_k, w_v, gamma)

    # f32 MXU inputs — tight check.
    out_f32 = jax.block_until_ready(
        simple_retention(x, w_q, w_k, w_v, gamma, compute_dtype=jnp.float32))
    assert out_f32.shape == (B, S, Dh)
    assert jnp.allclose(out_f32, ref, rtol=1e-2, atol=1e-2), (
        f"f32 max abs err {float(jnp.max(jnp.abs(out_f32 - ref)))}")

    # bf16 MXU inputs (recommended on v6e/v7x), f32 accumulation — looser check.
    out_bf16 = jax.block_until_ready(
        simple_retention(x, w_q, w_k, w_v, gamma, compute_dtype=jnp.bfloat16))
    assert out_bf16.shape == (B, S, Dh)
    assert jnp.allclose(out_bf16, ref, rtol=5e-2, atol=5e-2), (
        f"bf16 max abs err {float(jnp.max(jnp.abs(out_bf16 - ref)))}")

    print("KERNEL_OK")
</pallas_src>

<mosaic_0001>
module attributes {stable_mosaic.version = 11 : i64} {
  func.func @retention_kernel(%arg0: i32, %arg1: i32, %arg2: i32, %arg3: memref<1x8x32xf32, #tpu.memory_space<vmem>>, %arg4: memref<1x8x32xf32, #tpu.memory_space<vmem>>, %arg5: memref<32x16xf32, #tpu.memory_space<vmem>>, %arg6: memref<32x144xf32, #tpu.memory_space<vmem>>, %arg7: memref<8x16xf32, #tpu.memory_space<vmem>>, %arg8: memref<8x16xf32, #tpu.memory_space<vmem>>, %arg9: memref<8x16xf32, #tpu.memory_space<vmem>>, %arg10: memref<8x16xf32, #tpu.memory_space<vmem>>, %arg11: memref<1x8x128xf32, #tpu.memory_space<vmem>>, %arg12: memref<8x16xf32, #tpu.memory_space<vmem>>, %arg13: memref<8x128xf32, #tpu.memory_space<vmem>>) attributes {dimension_semantics = [#tpu.dimension_semantics<parallel>, #tpu.dimension_semantics<parallel>, #tpu.dimension_semantics<arbitrary>], iteration_bounds = array<i64: 2, 1, 1>, scalar_prefetch = 0 : i64, scratch_operands = 2 : i64, tpu.core_type = #tpu.core_type<tc>, window_params = [{transform_indices = @transform_0, window_bounds = array<i64: 1, 8, 32>}, {transform_indices = @transform_1, window_bounds = array<i64: 1, 8, 32>}, {pipeline_mode = #tpu.pipeline_mode<synchronous>, transform_indices = @transform_2, window_bounds = array<i64: 32, 16>}, {pipeline_mode = #tpu.pipeline_mode<synchronous>, transform_indices = @transform_3, window_bounds = array<i64: 32, 144>}, {transform_indices = @transform_4, window_bounds = array<i64: 8, 16>}, {transform_indices = @transform_5, window_bounds = array<i64: 8, 16>}, {transform_indices = @transform_6, window_bounds = array<i64: 8, 16>}, {transform_indices = @transform_7, window_bounds = array<i64: 8, 16>}, {transform_indices = @transform_8, window_bounds = array<i64: 1, 8, 128>}]} {
    %c8_i32 = arith.constant 8 : i32
    %0 = arith.muli %arg1, %c8_i32 : i32
    %c8_i32_0 = arith.constant 8 : i32
    %1 = arith.muli %arg2, %c8_i32_0 : i32
    %c0_i32 = arith.constant 0 : i32
    %2 = arith.cmpi eq, %arg2, %c0_i32 : i32
    %3 = arith.extui %2 : i1 to i32
    %c0_i32_1 = arith.constant 0 : i32
    %4 = arith.cmpi ne, %3, %c0_i32_1 : i32
    scf.if %4 {
      %cst = arith.constant 0.000000e+00 : f32
      %12 = vector.broadcast %cst : f32 to vector<8x128xf32>
      %c0 = arith.constant 0 : index
      %c0_5 = arith.constant 0 : index
      %13 = vector.load %arg13[%c0, %c0_5] : memref<8x128xf32, #tpu.memory_space<vmem>>, vector<8x128xf32>
      tpu.vector_store %arg13[%c0, %c0_5], %12 {strides = array<i32>} : memref<8x128xf32, #tpu.memory_space<vmem>>, vector<8x128xf32>,
      %c0_6 = arith.constant 0 : index
      %c0_7 = arith.constant 0 : index
      %c0_8 = arith.constant 0 : index
      %14 = vector.load %arg3[%c0_6, %c0_7, %c0_8] : memref<1x8x32xf32, #tpu.memory_space<vmem>>, vector<1x8x32xf32>
      %15 = vector.shape_cast %14 : vector<1x8x32xf32> to vector<8x32xf32>
      %c0_9 = arith.constant 0 : index
      %c0_10 = arith.constant 0 : index
      %16 = vector.load %arg5[%c0_9, %c0_10] : memref<32x16xf32, #tpu.memory_space<vmem>>, vector<32x16xf32>
      %cst_11 = arith.constant dense<0.000000e+00> : vector<8x16xf32>
      %17 = tpu.matmul %15, %16, %cst_11 {dimension_numbers = #tpu.dot_dimension_numbers<[1], [0], [0], [1], [0, 0, 1, 1], [], []>} : vector<8x32xf32>, vector<32x16xf32>, vector<8x16xf32> -> vector<8x16xf32>
      %c0_12 = arith.constant 0 : index
      %c0_13 = arith.constant 0 : index
      %18 = vector.load %arg7[%c0_12, %c0_13] : memref<8x16xf32, #tpu.memory_space<vmem>>, vector<8x16xf32>
      %19 = arith.mulf %17, %18 : vector<8x16xf32>
      %20 = vector.extract_strided_slice %17 {offsets = [0, 8], sizes = [8, 8], strides = [1, 1]} : vector<8x16xf32> to vector<8x8xf32>
      %cst_14 = arith.constant 0.000000e+00 : f32
      %21 = vector.broadcast %cst_14 : f32 to vector<8x8xf32>
      %22 = arith.subf %21, %20 : vector<8x8xf32>
      %23 = vector.extract_strided_slice %17 {offsets = [0, 0], sizes = [8, 8], strides = [1, 1]} : vector<8x16xf32> to vector<8x8xf32>
      %24 = tpu.concatenate %22, %23 in 1 : vector<8x8xf32>, vector<8x8xf32> -> vector<8x16xf32>
      %c0_15 = arith.constant 0 : index
      %c0_16 = arith.constant 0 : index
      %25 = vector.load %arg8[%c0_15, %c0_16] : memref<8x16xf32, #tpu.memory_space<vmem>>, vector<8x16xf32>
      %26 = arith.mulf %24, %25 : vector<8x16xf32>
      %27 = arith.addf %19, %26 : vector<8x16xf32>
      %c0_17 = arith.constant 0 : index
      %c0_18 = arith.constant 0 : index
      %28 = vector.load %arg12[%c0_17, %c0_18] : memref<8x16xf32, #tpu.memory_space<vmem>>, vector<8x16xf32>
      tpu.vector_store %arg12[%c0_17, %c0_18], %27 {strides = array<i32>} : memref<8x16xf32, #tpu.memory_space<vmem>>, vector<8x16xf32>,
    } else {
    }
    %c7_i32 = arith.constant 7 : i32
    %5 = arith.addi %0, %c7_i32 : i32
    %6 = arith.cmpi sle, %1, %5 : i32
    %7 = arith.extui %6 : i1 to i32
    %c0_i32_2 = arith.constant 0 : i32
    %8 = arith.cmpi ne, %7, %c0_i32_2 : i32
    scf.if %8 {
      %c0 = arith.constant 0 : index
      %c0_5 = arith.constant 0 : index
      %c0_6 = arith.constant 0 : index
      %12 = vector.load %arg4[%c0, %c0_5, %c0_6] : memref<1x8x32xf32, #tpu.memory_space<vmem>>, vector<1x8x32xf32>
      %13 = vector.shape_cast %12 : vector<1x8x32xf32> to vector<8x32xf32>
      %c0_7 = arith.constant 0 : index
      %c0_8 = arith.constant 0 : index
      %14 = vector.load %arg6[%c0_7, %c0_8] : memref<32x144xf32, #tpu.memory_space<vmem>>, vector<32x144xf32>
      %cst = arith.constant dense<0.000000e+00> : vector<8x144xf32>
      %15 = tpu.matmul %13, %14, %cst {dimension_numbers = #tpu.dot_dimension_numbers<[1], [0], [0], [1], [0, 0, 1, 1], [], []>} : vector<8x32xf32>, vector<32x144xf32>, vector<8x144xf32> -> vector<8x144xf32>
      %16 = vector.extract_strided_slice %15 {offsets = [0, 0], sizes = [8, 128], strides = [1, 1]} : vector<8x144xf32> to vector<8x128xf32>
      %17 = vector.extract_strided_slice %15 {offsets = [0, 128], sizes = [8, 16], strides = [1, 1]} : vector<8x144xf32> to vector<8x16xf32>
      %c0_9 = arith.constant 0 : index
      %c0_10 = arith.constant 0 : index
      %18 = vector.load %arg9[%c0_9, %c0_10] : memref<8x16xf32, #tpu.memory_space<vmem>>, vector<8x16xf32>
      %19 = arith.mulf %17, %18 : vector<8x16xf32>
      %20 = vector.extract_strided_slice %17 {offsets = [0, 8], sizes = [8, 8], strides = [1, 1]} : vector<8x16xf32> to vector<8x8xf32>
      %cst_11 = arith.constant 0.000000e+00 : f32
      %21 = vector.broadcast %cst_11 : f32 to vector<8x8xf32>
      %22 = arith.subf %21, %20 : vector<8x8xf32>
      %23 = vector.extract_strided_slice %17 {offsets = [0, 0], sizes = [8, 8], strides = [1, 1]} : vector<8x16xf32> to vector<8x8xf32>
      %24 = tpu.concatenate %22, %23 in 1 : vector<8x8xf32>, vector<8x8xf32> -> vector<8x16xf32>
      %c0_12 = arith.constant 0 : index
      %c0_13 = arith.constant 0 : index
      %25 = vector.load %arg10[%c0_12, %c0_13] : memref<8x16xf32, #tpu.memory_space<vmem>>, vector<8x16xf32>
      %26 = arith.mulf %24, %25 : vector<8x16xf32>
      %27 = arith.addf %19, %26 : vector<8x16xf32>
      %c0_14 = arith.constant 0 : index
      %c0_15 = arith.constant 0 : index
      %28 = vector.load %arg12[%c0_14, %c0_15] : memref<8x16xf32, #tpu.memory_space<vmem>>, vector<8x16xf32>
      %cst_16 = arith.constant dense<0.000000e+00> : vector<8x8xf32>
      %29 = tpu.matmul %28, %27, %cst_16 {dimension_numbers = #tpu.dot_dimension_numbers<[1], [1], [0], [0], [0, 0, 1, 0], [], []>} : vector<8x16xf32>, vector<8x16xf32>, vector<8x8xf32> -> vector<8x8xf32>
      %30 = arith.subi %0, %1 : i32
      %31 = tpu.iota {dimensions = array<i32: 0>} : vector<8x8xi32>
      %32 = tpu.iota {dimensions = array<i32: 1>} : vector<8x8xi32>
      %33 = arith.subi %31, %32 : vector<8x8xi32>
      %34 = vector.broadcast %30 : i32 to vector<8x8xi32>
      %35 = arith.addi %34, %33 : vector<8x8xi32>
      %c0_i32_17 = arith.constant 0 : i32
      %36 = vector.broadcast %c0_i32_17 : i32 to vector<8x8xi32>
      %37 = arith.cmpi sge, %35, %36 : vector<8x8xi32>
      %c0_i32_18 = arith.constant 0 : i32
      %38 = vector.broadcast %c0_i32_18 : i32 to vector<8x8xi32>
      %39 = arith.select %37, %35, %38 : vector<8x8xi1>, vector<8x8xi32>
      %40 = arith.sitofp %39 : vector<8x8xi32> to vector<8x8xf32>
      %cst_19 = arith.constant -0.105360515 : f32
      %41 = vector.broadcast %cst_19 : f32 to vector<8x8xf32>
      %42 = arith.mulf %40, %41 : vector<8x8xf32>
      %43 = math.exp %42 : vector<8x8xf32>
      %cst_20 = arith.constant 0.000000e+00 : f32
      %44 = vector.broadcast %cst_20 : f32 to vector<8x8xf32>
      %45 = arith.select %37, %43, %44 : vector<8x8xi1>, vector<8x8xf32>
      %46 = arith.mulf %29, %45 : vector<8x8xf32>
      %c0_21 = arith.constant 0 : index
      %c0_22 = arith.constant 0 : index
      %47 = vector.load %arg13[%c0_21, %c0_22] : memref<8x128xf32, #tpu.memory_space<vmem>>, vector<8x128xf32>
      %cst_23 = arith.constant dense<0.000000e+00> : vector<8x128xf32>
      %48 = tpu.matmul %46, %16, %cst_23 {dimension_numbers = #tpu.dot_dimension_numbers<[1], [0], [0], [1], [0, 0, 1, 1], [], []>} : vector<8x8xf32>, vector<8x128xf32>, vector<8x128xf32> -> vector<8x128xf32>
      %49 = arith.addf %47, %48 : vector<8x128xf32>
      %c0_24 = arith.constant 0 : index
      %c0_25 = arith.constant 0 : index
      %50 = vector.load %arg13[%c0_24, %c0_25] : memref<8x128xf32, #tpu.memory_space<vmem>>, vector<8x128xf32>
      tpu.vector_store %arg13[%c0_24, %c0_25], %49 {strides = array<i32>} : memref<8x128xf32, #tpu.memory_space<vmem>>, vector<8x128xf32>,
    } else {
    }
    %c0_i32_3 = arith.constant 0 : i32
    %9 = arith.cmpi eq, %arg2, %c0_i32_3 : i32
    %10 = arith.extui %9 : i1 to i32
    %c0_i32_4 = arith.constant 0 : i32
    %11 = arith.cmpi ne, %10, %c0_i32_4 : i32
    scf.if %11 {
      %c0 = arith.constant 0 : index
      %c0_5 = arith.constant 0 : index
      %12 = vector.load %arg13[%c0, %c0_5] : memref<8x128xf32, #tpu.memory_space<vmem>>, vector<8x128xf32>
      %c0_6 = arith.constant 0 : index
      %c0_7 = arith.constant 0 : index
      %c0_8 = arith.constant 0 : index
      %13 = vector.load %arg11[%c0_6, %c0_7, %c0_8] : memref<1x8x128xf32, #tpu.memory_space<vmem>>, vector<1x8x128xf32>
      %14 = vector.shape_cast %13 : vector<1x8x128xf32> to vector<8x128xf32>
      %15 = vector.shape_cast %12 : vector<8x128xf32> to vector<1x8x128xf32>
      tpu.vector_store %arg11[%c0_6, %c0_7, %c0_8], %15 {strides = array<i32>} : memref<1x8x128xf32, #tpu.memory_space<vmem>>, vector<1x8x128xf32>,
    } else {
    }
    return
  }
  func.func @transform_0(%arg0: i32, %arg1: i32, %arg2: i32) -> (i32, i32, i32) {
    %c0_i32 = arith.constant 0 : i32
    %c0_i32_0 = arith.constant 0 : i32
    return %arg0, %arg1, %c0_i32 : i32, i32, i32
  }
  func.func @transform_1(%arg0: i32, %arg1: i32, %arg2: i32) -> (i32, i32, i32) {
    %c0_i32 = arith.constant 0 : i32
    %c0_i32_0 = arith.constant 0 : i32
    return %arg0, %arg2, %c0_i32 : i32, i32, i32
  }
  func.func @transform_2(%arg0: i32, %arg1: i32, %arg2: i32) -> (i32, i32) {
    %c0_i32 = arith.constant 0 : i32
    %c0_i32_0 = arith.constant 0 : i32
    %c0_i32_1 = arith.constant 0 : i32
    return %c0_i32, %c0_i32_0 : i32, i32
  }
  func.func @transform_3(%arg0: i32, %arg1: i32, %arg2: i32) -> (i32, i32) {
    %c0_i32 = arith.constant 0 : i32
    %c0_i32_0 = arith.constant 0 : i32
    %c0_i32_1 = arith.constant 0 : i32
    return %c0_i32, %c0_i32_0 : i32, i32
  }
  func.func @transform_4(%arg0: i32, %arg1: i32, %arg2: i32) -> (i32, i32) {
    %c0_i32 = arith.constant 0 : i32
    %c0_i32_0 = arith.constant 0 : i32
    return %arg1, %c0_i32 : i32, i32
  }
  func.func @transform_5(%arg0: i32, %arg1: i32, %arg2: i32) -> (i32, i32) {
    %c0_i32 = arith.constant 0 : i32
    %c0_i32_0 = arith.constant 0 : i32
    return %arg1, %c0_i32 : i32, i32
  }
  func.func @transform_6(%arg0: i32, %arg1: i32, %arg2: i32) -> (i32, i32) {
    %c0_i32 = arith.constant 0 : i32
    %c0_i32_0 = arith.constant 0 : i32
    return %arg2, %c0_i32 : i32, i32
  }
  func.func @transform_7(%arg0: i32, %arg1: i32, %arg2: i32) -> (i32, i32) {
    %c0_i32 = arith.constant 0 : i32
    %c0_i32_0 = arith.constant 0 : i32
    return %arg2, %c0_i32 : i32, i32
  }
  func.func @transform_8(%arg0: i32, %arg1: i32, %arg2: i32) -> (i32, i32, i32) {
    %c0_i32 = arith.constant 0 : i32
    %c0_i32_0 = arith.constant 0 : i32
    return %arg0, %arg1, %c0_i32 : i32, i32, i32
  }
}

</mosaic_0001>

<bundles_post_ra>
// kernel: tpu_custom_call.1
= control target key start
LH: loop header
LB: loop body
LE: loop exit
PB: predicated region body
PF: predicated region fallthrough
CT: control target
= control target key end

     0   :  { %s1344_s0 = inlined_call_operand.vmem [shape: f32[2,8,32], index: 0, kind: input, shape index: {}]   ;;  %s1345_s1 = inlined_call_operand.vmem [shape: f32[2,8,32], index: 1, kind: input, shape index: {}]   ;;  %s1346_s2 = inlined_call_operand.vmem [shape: f32[32,16], index: 2, kind: input, shape index: {}]   ;;  %s1347_s3 = inlined_call_operand.hbm [shape: f32[32,144], index: 3, kind: input, shape index: {}]   ;;  %s1348_s4 = inlined_call_operand.vmem [shape: f32[8,16], index: 4, kind: input, shape index: {}]   ;;  %s1349_s5 = inlined_call_operand.vmem [shape: f32[8,16], index: 5, kind: input, shape index: {}]   ;;  %s1350_s6 = inlined_call_operand.hbm [shape: f32[8,16], index: 6, kind: input, shape index: {}]   ;;  %s1351_s7 = inlined_call_operand.hbm [shape: f32[8,16], index: 7, kind: input, shape index: {}]   ;;  %s1352_s8 = inlined_call_operand.hbm [shape: f32[2,8,128], index: 8, kind: output, shape index: {}]  }
   0x1   :  { %1356 = sst [smem:[#allocation18_spill]] %s1350_s6 }
   0x2   :  { %13 = vsyncpa [#allocation5], 0 }
   0x3   :  { %14 = vsyncpa [#allocation8], 0 }
   0x4   :  { %15 = vsyncpa [#allocation6], 0 }
   0x5   :  { %17 = vsyncpa [#allocation6 + $0x1], 0  ;;  %s1179_s27 = smov 0   ;;  %s1181_s28 = smov 0  }
   0x6   :  { %s1183_s29 = smov 0   ;;  %s1185_s30 = smov 0  }
   0x7   :  { %s1187_s9 = smov 0   ;;  %s1189_s10 = smov 0  }
   0x8 LB: > { %1357 = sst [smem:[#allocation14_spill]] %s1113_s29  ;;  %s829_s11 = sadd.s32 4294967295, %s1125_s10   ;;  %s1125_s10 = sphi %s1189_s10, %s23_s10   ;;  %s1121_s9 = sphi %s1187_s9, %s1370_s9   ;;  %s1117_s30 = sphi %s1185_s30, %s1369_s30   ;;  %s1113_s29 = sphi %s1183_s29, %s1368_s29   ;;  %s1109_s28 = sphi %s1181_s28, %s1372_s28   ;;  %s1105_s27 = sphi %s1179_s27, %s1371_s27  }
   0x9   : > { %1358 = sst [smem:[#allocation15_spill]] %s1121_s9  ;;  %s830_s12 = sadd.s32 4294967294, %s1125_s10  }
   0xa   : > { %s42_s13 = sadd.s32 1, %s1121_s9  ;;  %s253_s14 = sadd.s32 1, %s1113_s29 }
   0xb   : > { %p44_p0 = scmp.ge.s32.totalorder %s42_s13, 2  ;;  %p263_p1 = scmp.ne.s32.totalorder %s1113_s29, %s1109_s28 }
   0xc   : > { %p264_p2 = scmp.eq.s32.totalorder %s829_s11, 1  ;;  %p269_p3 = scmp.ne.s32.totalorder %s1109_s28, %s1105_s27 }
   0xd   : > { %s1374_s13 = smov (%p44_p0, %s42_s13), 0  ;;  %p270_p5 = scmp.eq.s32.totalorder %s830_s12, 1 }
   0xe   : > { %1359 = sst [smem:[#allocation16_spill]] %s1374_s13  ;;  %p1219_p4 = por %p264_p2, %p263_p1 }
   0xf   : > { %s248_s16 = ssub.s32 %s1121_s9, %s1374_s13  ;;  %p831_p6 = scmp.ge.s32.totalorder %s1125_s10, 1 }
  0x10   : > { %p251_p7 = scmp.eq.s32.totalorder %s248_s16, 0  ;;  %p1226_p8 = por %p270_p5, %p269_p3 }
  0x11   : > { %p277_p9 = scmp.lt.s32.totalorder %s1125_s10, 3  ;;  %p1238_p11 = scmp.eq.s32.totalorder %s829_s11, 0 }
  0x12   : > { %s1232_s18 = scalar_select %p251_p7, %s1113_s29, %s253_s14  }
  0x13   : > { %p1234_p10 = pnand %p831_p6, %p277_p9  ;;  %s1365_s6 = sld [smem:[#allocation18_spill]] }
  0x14   : > { %1362 = sst [smem:[#allocation17_spill]] %s1232_s18  ;;  %s1127_s24 = smov [#allocation7]  }
  0x15   : > { %p871_p12 = pneg %p1234_p10  ;;  %s324_s25 = sshll.u32 %s1127_s24, 4  ;;  %s325_s25 = int_to_ptr.vmem [resolvable:$true] %s324_s25 }
  0x16   : > { %s291_s14 = sshll.u32 %s1347_s3, 4  ;;  %s1128_s16 = smov [#allocation4]   ;;  %s292_s14 = int_to_ptr.hbm [resolvable:$true] %s291_s14 }
  0x17   : > { %p1249_p13 = pnand %p1238_p11, %p871_p12  ;;  %s293_s21 = sshll.u32 %s1128_s16, 4  ;;  %s294_s21 = int_to_ptr.vmem [resolvable:$true] %s293_s21 }
  0x18   : > { %s1129_s13 = smov 256   ;;  %s1130_s9 = smov 16  }
  0x19   : > { %s322_s23 = sshll.u32 %s1365_s6, 4  ;;  %s336_s6 = sshll.u32 %s1351_s7, 4  ;;  %s323_s23 = int_to_ptr.hbm [resolvable:$true] %s322_s23  ;;  %s337_s6 = int_to_ptr.hbm [resolvable:$true] %s336_s6 }
  0x1a   : > { %877 = dma.hbm_to_vmem [thread:$0]  (!%p1249_p13), %s323_s23, 128, %s325_s25, [#allocation8]  }
  0x1b   : > { %874 = dma.hbm_to_vmem [thread:$0]  (!%p1249_p13), %s292_s14, 1024, %s294_s21, [#allocation5], %s1129_s13, %s1129_s13, %s1130_s9  }
  0x1c   : > { %s1131_s18 = smov [#allocation9]   ;;  %371 = sbr.rel (%p1234_p10) target bundleno = 578 (0x242), region = 52 }
  0x1d   : > { %s338_s29 = sshll.u32 %s1131_s18, 4  ;;  %s339_s29 = int_to_ptr.vmem [resolvable:$true] %s338_s29 }
  0x1e   : > { %880 = dma.hbm_to_vmem [thread:$0]  (!%p1249_p13), %s337_s6, 128, %s339_s29, [#allocation8]  }
  0x21   : > { %1092 = dma.done.wait (%p1238_p11), [#allocation5], 1024  }
  0x22   : > { %1094 = vsyncadd (%p1238_p11), [#allocation5], 4294966272 }
  0x23   : > { %1096 = dma.done.wait (%p1238_p11), [#allocation8], 256  }
  0x24   : > { %1098 = vsyncadd (%p1238_p11), [#allocation8], 4294967040  ;;  %p433_p0 = scmp.lt.s32.totalorder %s1117_s30, 1  ;;  %v466_v0 = vld [vmem:[%s1346_s2 + $0x18] sm:$0xff]  ;;  %v522_v1 = vld [vmem:[#allocation4 + $0x38] sm:$0xff]  ;;  %vm467_vm0 = vcmask 261120   ;;  %v612_v35 = vlaneseq }
  0x25   : > { %v465_v2 = vld [vmem:[%s1346_s2 + $0x10] sm:$0xff]  ;;  %483 = vmatpush.msra.mxu0 %v466_v0  ;;  %559 = vmatpush.msra.mxu2 %v522_v1  ;;  %v464_v4 = vld [vmem:[%s1346_s2 + $0x8] sm:$0xff]  ;;  %v518_v5 = vld [vmem:[#allocation4 + $0x18] sm:$0xff]  ;;  %s1132_s24 = smov 120   ;;  %vm502_vm1 = vcmask 64512   ;;  %vm507_vm2 = vcmask 130048  }
  0x26   : > { %s434_s9 = scalar_select %p433_p0, %s1117_s30, 1  ;;  %v520_v3 = vld [vmem:[#allocation4 + $0x28] sm:$0xff]  ;;  %v463_v6 = vld [vmem:[%s1346_s2] sm:$0xff]  ;;  %v521_v14 = vld [vmem:[#allocation4 + $0x30] sm:$0xff]  ;;  %v613_v37 = vshrl.u32 %v612_v35, 7  ;;  %v615_v38 = vand.u32 127, %v612_v35 }
  0x27   : > { %484 = vmatpush.msra.mxu0 %v465_v2  ;;  %560 = vmatpush.msra.mxu2 %v520_v3  ;;  %v516_v7 = vld [vmem:[#allocation4 + $0x8] sm:$0xff]  ;;  %v519_v15 = vld [vmem:[#allocation4 + $0x20] sm:$0xff]  ;;  %v517_v16 = vld [vmem:[#allocation4 + $0x10] sm:$0xff]  ;;  %s430_s19 = sand.u32 1, %s1109_s28   ;;  %s854_s20 = sshll.u32 %s1117_s30, 3 }
  0x28   : > { %s843_s6 = sshll.u32 %s434_s9, 3  ;;  %s1133_s9 = smov 8   ;;  %539 = vmatpush.msra.mxu1 %v521_v14  ;;  %v515_v17 = vld [vmem:[#allocation4] sm:$0xff]  ;;  %v491_v20 = vld [vmem:[%s1348_s4] sm:$0xff]  ;;  %v580_v28 = vld [vmem:[#allocation9] sm:$0xff]  ;;  %v616_v39 = vsub.s32 %v613_v37, %v615_v38 }
  0x29   : > { %s439_s11 = scalar_lea.vmem %s1344_s0, %s843_s6  ;;  %s446_s16 = scalar_lea.vmem %s1345_s1, %s843_s6  ;;  %485 = vmatpush.msra.mxu0 %v464_v4  ;;  %561 = vmatpush.msra.mxu2 %v518_v5  ;;  %v504_v21 = vld [vmem:[%s1349_s5] sm:$0xff]  ;;  %v567_v27 = vld [vmem:[#allocation7] sm:$0xff] }
  0x2a   : > { %v462_v8 = vld [vmem:[%s439_s11] sm:$0xff]  ;;  %540 = vmatpush.msra.mxu1 %v519_v15  ;;  %v850_v40 = vcvt.s32.f32 %v616_v39  ;;  %vm619_vm3 = vcmp.ge.s32.totalorder %v616_v39, 0  ;;  %s842_s23 = sshll.u32 %s430_s19, 3  ;;  %s670_s11 = scalar_lea.hbm %s1352_s8, %s854_s20 }
  0x2b   : > { %v514_v9 = vld [vmem:[%s446_s16] sm:$0xff]  ;;  %486 = vmatpush.msra.mxu0 %v463_v6  ;;  %562 = vmatpush.msra.mxu2 %v516_v7  ;;  %s432_s12 = scalar_lea.vmem [#allocation10], %s842_s23  ;;  %s674_s16 = sshll.u32 %s670_s11, 4  ;;  %s675_s16 = int_to_ptr.hbm [resolvable:$true] %s674_s16 }
  0x2c   : > { %845 = vmatmul.msk.f32.vlgmr.msra.gmra.mxu0 %vm467_vm0, %v462_v8  ;;  %847 = vmatmul.msk.f32.vlgmr.msra.gmra.mxu2 %vm467_vm0, %v514_v9  ;;  %v851_v41 = vsel %vm619_vm3, %v850_v40, 0.0  ;;  %s672_s14 = sshll.u32 %s432_s12, 4  ;;  %s659_s21 = scalar_lea.sflag [#allocation6], %s430_s19  ;;  %s673_s14 = int_to_ptr.vmem [resolvable:$true] %s672_s14 }
  0x2d   : > { %541 = vmatpush.msra.mxu1 %v517_v16  ;;  %v622_v42 = vmul.f32 -0.105360515, %v851_v41  ;;  %s1053_s22 = sshra.s32 %s675_s16, 4  ;;  %s1059_s6 = scalar_lea.hbm %s1352_s8, 16  ;;  %s1054_s22 = int_to_ptr.hbm [resolvable:$true] %s1053_s22 }
  0x2e   : > { %p1060_p5 = scmp.lt.s32.totalorder %s1054_s22, %s1352_s8 }
  0x2f   : > { %542 = vmatpush.msra.mxu1 %v515_v17  ;;  %v623_v43 = vmul.f32 1.442695, %v622_v42 }
  0x30   : > { %846 = vmatmul.msk.f32.vlgmr.msra.gmra.mxu1 %vm467_vm0, %v514_v9 }
  0x31   : > { %947 = vpow2.f32 %v623_v43 }
  0x37   : > { %v948_v44 = vpop.eup %947 }
  0x38   : > { %v625_v45 = vsel %vm619_vm3, %v948_v44, 0.0 }
  0xa9   : > { %v488_v10 = vpop.f32.mrf.mxu0 }
  0xaa   : > { %v493_v11 = vsub.f32 0.0, %v488_v10  ;;  %v492_v24 = vmul.f32 %v491_v20, %v488_v10 }
  0xac   : > { %495 = vrot.lane.b32.xlu0 %v493_v11, %s1132_s24 }
  0xad   : > { %v544_v36 = vpop.f32.mrf.mxu1 }
  0xaf   : > { %v564_v12 = vpop.f32.mrf.mxu2 }
  0xb0   : > { %v569_v13 = vsub.f32 0.0, %v564_v12  ;;  %v568_v31 = vmul.f32 %v567_v27, %v564_v12 }
  0xb2   : > { %571 = vrot.lane.b32.xlu1 %v569_v13, %s1132_s24  ;;  %s1055_s24 = scalar_lea.hbm %s1054_s22, 8 }
  0xb3   : > { %p1056_p1 = scmp.ne.s32.totalorder %s1054_s22, %s1055_s24  ;;  %p1061_p6 = scmp.lt.s32.totalorder %s1059_s6, %s1055_s24 }
  0xb4   : > { %499 = vrot.lane.b32.xlu0 %v488_v10, %s1133_s9 }
  0xb5   : > { %p1057_p2 = pnand %p1056_p1, %p1219_p4  ;;  %p1062_p7 = por %p1061_p6, %p1060_p5 }
  0xb7   : > { %p1058_p3 = pneg %p1057_p2 }
  0xb9   : > { %p1063_p9 = pnand %p1062_p7, %p1058_p3 }
  0xba   : > { %575 = vrot.lane.b32.xlu1 %v564_v12, %s1133_s9 }
 0x11e   : > { %v496_v18 = vpop.permute.xlu0 %495 }
 0x124   : > { %v572_v19 = vpop.permute.xlu1 %571 }
 0x126   : > { %v500_v22 = vpop.permute.xlu0 %499 }
 0x127   : > { %v503_v23 = vsel %vm502_vm1, %v496_v18, %v500_v22 }
 0x128   : > { %v505_v25 = vmul.f32 %v504_v21, %v503_v23 }
 0x12a   : > { %v506_v26 = vadd.f32 %v505_v25, %v492_v24 }
 0x12c   : > { %v576_v29 = vpop.permute.xlu1 %575  ;;  %508 = vst.msk [vmem:[#allocation2] sm:$0xff] %vm507_vm2, %v506_v26 }
 0x12d   : > { %v579_v30 = vsel %vm502_vm1, %v572_v19, %v576_v29 }
 0x12e   : > { %v581_v32 = vmul.f32 %v580_v28, %v579_v30 }
 0x130   : > { %v582_v33 = vadd.f32 %v581_v32, %v568_v31 }
 0x132   : > { %848 = vmatpush.xpose.msk.msra.mxu3 %vm507_vm2, %v582_v33 }
 0x133   : > { %v583_v34 = vld [vmem:[#allocation2] sm:$0xff] }
 0x135   : > { %849 = vmatmul.msk.f32.vlgmr.msra.gmra.mxu3 %vm507_vm2, %v583_v34 }
 0x136   : > { %646 = vmatpush.msrb.mxu3 %v544_v36 }
 0x1b8   : > { %v608_v46 = vpop.f32.mrf.mxu3 }
 0x1b9   : > { %v626_v47 = vmul.f32 %v625_v45, %v608_v46 }
 0x1bb   : > { %852 = vmatmul.msk.f32.vlgmr.msrb.gmra.mxu3 %vm502_vm1, %v626_v47 }
 0x23e   : > { %v648_v48 = vpop.f32.mrf.mxu3 }
 0x23f   : > { %657 = vst [vmem:[%s432_s12] sm:$0xff] %v648_v48 }
 0x240   : > { %1066 = shalt.err (!%p1063_p9)
}
 0x241   : > { %869 = dma.vmem_to_hbm [thread:$0]  (%p1219_p4), %s673_s14, 128, %s675_s16, %s659_s21  }
 0x242 PF: > { %p891_p10 = scmp.ge.s32.totalorder %s1125_s10, 2  ;;  %s686_s18 = sand.u32 1, %s1105_s27  }
 0x243   : > { %s687_s19 = scalar_lea.sflag [#allocation6], %s686_s18 }
 0x244   : > { %p882_p11 = pnand %p891_p10, %p1226_p8 }
 0x246   : > { %p883_p12 = pneg %p882_p11 }
 0x248   : > { %1100 = dma.done.wait (%p883_p12), %s687_s19, 128  }
 0x249   : > { %1102 = vsyncadd (%p883_p12), %s687_s19, 4294967168  ;;  %s23_s10 = sadd.s32 1, %s1125_s10   ;;  %s1367_s23 = sld [smem:[#allocation14_spill]] }
 0x24a   : > { %p20_p13 = scmp.ge.s32.totalorder %s23_s10, 4   ;;  %s1368_s29 = sld [smem:[#allocation17_spill]] }
 0x24b   : > { %s1369_s30 = sld [smem:[#allocation15_spill]]  ;;  %s1371_s27 = smov %s1109_s28 }
 0x24c   : > { %s1370_s9 = sld [smem:[#allocation16_spill]]  ;;  %22 = sbr.rel (!%p20_p13) target bundleno = 8 (0x8), region = 123 }
 0x24f   : > { %s1372_s28 = smov %s1367_s23 }
 0x251   :  { %693 = vsyncpa [#allocation5], 1 }
 0x252   :  { %695 = vsyncpa [#allocation5 + $0x1], 1 }
 0x253   :  { %696 = vsyncpa [#allocation8], 1 }
 0x254   :  { %697 = vsyncpa [#allocation6], 1 }
 0x255   :  { %699 = vsyncpa [#allocation6 + $0x1], 1 }

</bundles_post_ra>
